<compile_context>
chip_gen: v6e
topology: v6e:2x2x1
jax: 0.10.0
libtpu: 0.0.40
codegen_flags: <defaults>
</compile_context>

<pallas_src>
import jax
import jax.numpy as jnp
from jax.experimental import pallas as pl
from jax.experimental.pallas import tpu as pltpu


def _round_up(n, m):
    return ((n + m - 1) // m) * m


def _cdiv(a, b):
    return -(-a // b)


def mlp_kernel(x_ref, w1_ref, b1_ref, w2_ref, b2_ref, w3_ref, b3_ref, o_ref):
    # x arrives as f32 directly from HBM; cast to bf16 in-register for the MXU.
    x = x_ref[...].astype(jnp.bfloat16)
    # Layer 1: bf16 MXU matmul, f32 accumulate; bias add + ReLU in f32 on the VPU.
    h1 = jnp.dot(x, w1_ref[...], preferred_element_type=jnp.float32)
    h1 = jnp.maximum(h1 + b1_ref[...], 0.0)
    # Layer 2: Linear + ReLU.
    h2 = jnp.dot(h1.astype(jnp.bfloat16), w2_ref[...],
                 preferred_element_type=jnp.float32)
    h2 = jnp.maximum(h2 + b2_ref[...], 0.0)
    # Layer 3: Linear (no activation).
    out = jnp.dot(h2.astype(jnp.bfloat16), w3_ref[...],
                  preferred_element_type=jnp.float32)
    out = out + b3_ref[...]
    # Write back only the valid class lanes (o_ref last dim == num_classes), so the
    # f32 writeback is ~num_classes lanes per row instead of a 128-lane padded slab.
    o_ref[...] = out[:, : o_ref.shape[-1]].astype(o_ref.dtype)


def prepare_params(params):
    """One-time lane-padding (feature dims -> multiples of 128) + bf16 weight cast.

    Hoisted out of the per-call path.  Zero padding is numerically inert because
    ReLU(x @ 0 + 0) = 0 propagates zeros through the padded columns.
    """
    w1, b1, w2, b2, w3, b3 = (params["w1"], params["b1"], params["w2"],
                              params["b2"], params["w3"], params["b3"])
    D1 = w1.shape[1]
    D2 = w2.shape[1]
    C = w3.shape[1]
    D1p = _round_up(D1, 128)   # 200 -> 256
    D2p = _round_up(D2, 128)   # 52  -> 128
    Cp = _round_up(C, 128)     # num_classes -> 128 (VMEM-only padding; output is unpadded)
    return {
        "w1": jnp.pad(w1, ((0, 0), (0, D1p - D1))).astype(jnp.bfloat16),
        "b1": jnp.pad(b1, ((0, 0), (0, D1p - D1))).astype(jnp.float32),
        "w2": jnp.pad(w2, ((0, D1p - D1), (0, D2p - D2))).astype(jnp.bfloat16),
        "b2": jnp.pad(b2, ((0, 0), (0, D2p - D2))).astype(jnp.float32),
        "w3": jnp.pad(w3, ((0, D2p - D2), (0, Cp - C))).astype(jnp.bfloat16),
        "b3": jnp.pad(b3, ((0, 0), (0, Cp - C))).astype(jnp.float32),
    }


def classifier_forward(x, prep, num_classes, *, max_batch_tile=2048):
    """x: [B, hidden_dim] float32.  prep: output of prepare_params.  Returns [B, num_classes] f32."""
    w1, b1, w2, b2, w3, b3 = (prep["w1"], prep["b1"], prep["w2"],
                              prep["b2"], prep["w3"], prep["b3"])
    B, H = x.shape
    D1p = w1.shape[1]
    D2p = w2.shape[1]
    Cp = w3.shape[1]
    C = num_classes

    # ---- Batch-tile selection.
    # VMEM need per batch row (double-buffered x and output tiles + f32 temps + bf16 x copy).
    per_row_bytes = (2 * H * 4            # x tile, f32, double-buffered
                     + 2 * C * 4          # output tile, f32, double-buffered
                     + H * 2              # bf16 copy of the x tile
                     + (D1p + D2p + Cp) * 4)   # h1 / h2 / pre-slice out temps (f32)
    weight_bytes = (H * D1p + D1p * D2p + D2p * Cp) * 2 + (D1p + D2p + Cp) * 4
    vmem_budget = 40 * 1024 * 1024        # stay well under v7x's 64 MiB / TC
    tile_cap = max(8, ((vmem_budget - 2 * weight_bytes) // per_row_bytes) // 8 * 8)
    max_tile = max(8, min(max_batch_tile, tile_cap))

    n_tiles = _cdiv(B, max_tile)
    if n_tiles == 1 and B >= 16:
        n_tiles = 2                       # >= 2 grid steps so both v7x TensorCores get work
    tb = min(_round_up(_cdiv(B, n_tiles), 8), max_tile)
    Bp = _round_up(B, tb)                 # at most (tb-1) < one tile of padding; tb chosen from B

    xp = x if Bp == B else jnp.pad(x, ((0, Bp - B), (0, 0)))

    grid = (Bp // tb,)

    # Weights / biases are small and constant across the grid: full (padded) arrays stay
    # resident in VMEM; the constant index_map means Pallas does not re-DMA them per step.
    def full(shape):
        return pl.BlockSpec(shape, lambda i: (0,) * len(shape))

    vmem_limit = int(min(48 << 20, max(2 * weight_bytes + per_row_bytes * tb + (4 << 20),
                                       16 << 20)))

    flops = 2 * Bp * (H * D1p + D1p * D2p + D2p * Cp)
    bytes_accessed = xp.size * 4 + weight_bytes + Bp * C * 4

    out = pl.pallas_call(
        mlp_kernel,
        out_shape=jax.ShapeDtypeStruct((Bp, C), jnp.float32),
        grid_spec=pltpu.PrefetchScalarGridSpec(
            num_scalar_prefetch=0,
            grid=grid,
            in_specs=[
                pl.BlockSpec((tb, H), lambda i: (i, 0)),     # x tile (f32 straight from HBM)
                full((H, D1p)), full((1, D1p)),              # layer 1
                full((D1p, D2p)), full((1, D2p)),            # layer 2
                full((D2p, Cp)), full((1, Cp)),              # layer 3
            ],
            out_specs=pl.BlockSpec((tb, C), lambda i: (i, 0)),
        ),
        compiler_params=pltpu.CompilerParams(
            dimension_semantics=("parallel",),
            vmem_limit_bytes=vmem_limit,
        ),
        cost_estimate=pl.CostEstimate(flops=flops, transcendentals=0,
                                      bytes_accessed=bytes_accessed),
    )(xp, w1, b1, w2, b2, w3, b3)

    # Strip batch padding (output already has exactly num_classes columns).
    return out[:B, :]


def init_params(key, hidden_dim, num_classes):
    """Deterministic synthetic init (shapes match the nn.Linear layers), pre-transposed to [in, out]."""
    dims = [(hidden_dim, 200), (200, 52), (52, num_classes)]
    params = {}
    keys = jax.random.split(key, 2 * len(dims))
    for idx, (fan_in, fan_out) in enumerate(dims):
        bound = 1.0 / jnp.sqrt(fan_in)
        w = jax.random.uniform(keys[2 * idx], (fan_in, fan_out),
                               minval=-bound, maxval=bound, dtype=jnp.float32)
        b = jax.random.uniform(keys[2 * idx + 1], (1, fan_out),
                               minval=-bound, maxval=bound, dtype=jnp.float32)
        params[f"w{idx + 1}"] = w
        params[f"b{idx + 1}"] = b
    return params


def reference_forward_f32(x, params):
    h = jnp.maximum(x @ params["w1"] + params["b1"], 0.0)
    h = jnp.maximum(h @ params["w2"] + params["b2"], 0.0)
    return h @ params["w3"] + params["b3"]


def reference_forward_bf16(x, params):
    """Mirrors the kernel's numerics: bf16 matmul inputs, f32 accumulation."""
    bf16 = jnp.bfloat16
    dot = lambda a, b: jnp.dot(a.astype(bf16), b.astype(bf16),
                               preferred_element_type=jnp.float32)
    h = jnp.maximum(dot(x, params["w1"]) + params["b1"], 0.0)
    h = jnp.maximum(dot(h, params["w2"]) + params["b2"], 0.0)
    return dot(h, params["w3"]) + params["b3"]


if __name__ == "__main__":
    hidden_dim = 32
    num_classes = 10
    batch = 8

    key = jax.random.PRNGKey(0)
    k_x, k_p = jax.random.split(key)
    x = jax.random.normal(k_x, (batch, hidden_dim), dtype=jnp.float32)
    params = init_params(k_p, hidden_dim, num_classes)
    prep = prepare_params(params)   # one-time pad + cast, outside the per-call path

    out = classifier_forward(x, prep, num_classes)
    out = jax.block_until_ready(out)
    assert out.shape == (batch, num_classes)
    assert out.dtype == jnp.float32

    # Tight check vs a reference with matching numerics (bf16 matmul inputs, f32 accum).
    ref_bf16 = reference_forward_bf16(x, params)
    assert jnp.allclose(out, ref_bf16, atol=1e-4, rtol=1e-4), "mismatch vs bf16-matched reference"

    # Loose sanity check vs the pure-f32 reference (bf16 matmul inputs cost ~0.2-0.5% rel).
    # TODO(synk): if exact f32 parity with torch is required, run the MXU in HIGHEST precision.
    ref_f32 = reference_forward_f32(x, params)
    assert jnp.allclose(out, ref_f32, atol=5e-2, rtol=5e-2), "mismatch vs f32 reference"

    print("KERNEL_OK")
</pallas_src>

<mosaic_0001>
module attributes {stable_mosaic.version = 11 : i64} {
  func.func @mlp_kernel(%arg0: i32, %arg1: memref<8x32xf32, #tpu.memory_space<vmem>>, %arg2: memref<32x256xbf16, #tpu.memory_space<vmem>>, %arg3: memref<1x256xf32, #tpu.memory_space<vmem>>, %arg4: memref<256x128xbf16, #tpu.memory_space<vmem>>, %arg5: memref<1x128xf32, #tpu.memory_space<vmem>>, %arg6: memref<128x128xbf16, #tpu.memory_space<vmem>>, %arg7: memref<1x128xf32, #tpu.memory_space<vmem>>, %arg8: memref<8x10xf32, #tpu.memory_space<vmem>>) attributes {dimension_semantics = [#tpu.dimension_semantics<parallel>], iteration_bounds = array<i64: 1>, scalar_prefetch = 0 : i64, scratch_operands = 0 : i64, tpu.core_type = #tpu.core_type<tc>, window_params = [{transform_indices = @transform_0, window_bounds = array<i64: 8, 32>}, {pipeline_mode = #tpu.pipeline_mode<synchronous>, transform_indices = @transform_1, window_bounds = array<i64: 32, 256>}, {pipeline_mode = #tpu.pipeline_mode<synchronous>, transform_indices = @transform_2, window_bounds = array<i64: 1, 256>}, {pipeline_mode = #tpu.pipeline_mode<synchronous>, transform_indices = @transform_3, window_bounds = array<i64: 256, 128>}, {pipeline_mode = #tpu.pipeline_mode<synchronous>, transform_indices = @transform_4, window_bounds = array<i64: 1, 128>}, {pipeline_mode = #tpu.pipeline_mode<synchronous>, transform_indices = @transform_5, window_bounds = array<i64: 128, 128>}, {pipeline_mode = #tpu.pipeline_mode<synchronous>, transform_indices = @transform_6, window_bounds = array<i64: 1, 128>}, {transform_indices = @transform_7, window_bounds = array<i64: 8, 10>}]} {
    %c0 = arith.constant 0 : index
    %c0_0 = arith.constant 0 : index
    %0 = vector.load %arg1[%c0, %c0_0] : memref<8x32xf32, #tpu.memory_space<vmem>>, vector<8x32xf32>
    %1 = arith.truncf %0 : vector<8x32xf32> to vector<8x32xbf16>
    %c0_1 = arith.constant 0 : index
    %c0_2 = arith.constant 0 : index
    %2 = vector.load %arg2[%c0_1, %c0_2] : memref<32x256xbf16, #tpu.memory_space<vmem>>, vector<32x256xbf16>
    %cst = arith.constant dense<0.000000e+00> : vector<8x256xf32>
    %3 = tpu.matmul %1, %2, %cst {dimension_numbers = #tpu.dot_dimension_numbers<[1], [0], [0], [1], [0, 0, 1, 1], [], []>} : vector<8x32xbf16>, vector<32x256xbf16>, vector<8x256xf32> -> vector<8x256xf32>
    %c0_3 = arith.constant 0 : index
    %c0_4 = arith.constant 0 : index
    %4 = vector.load %arg3[%c0_3, %c0_4] : memref<1x256xf32, #tpu.memory_space<vmem>>, vector<1x256xf32>
    %5 = vector.broadcast %4 : vector<1x256xf32> to vector<8x256xf32>
    %6 = arith.addf %3, %5 : vector<8x256xf32>
    %cst_5 = arith.constant 0.000000e+00 : f32
    %7 = vector.broadcast %cst_5 : f32 to vector<8x256xf32>
    %8 = arith.maximumf %6, %7 : vector<8x256xf32>
    %9 = arith.truncf %8 : vector<8x256xf32> to vector<8x256xbf16>
    %c0_6 = arith.constant 0 : index
    %c0_7 = arith.constant 0 : index
    %10 = vector.load %arg4[%c0_6, %c0_7] : memref<256x128xbf16, #tpu.memory_space<vmem>>, vector<256x128xbf16>
    %cst_8 = arith.constant dense<0.000000e+00> : vector<8x128xf32>
    %11 = tpu.matmul %9, %10, %cst_8 {dimension_numbers = #tpu.dot_dimension_numbers<[1], [0], [0], [1], [0, 0, 1, 1], [], []>} : vector<8x256xbf16>, vector<256x128xbf16>, vector<8x128xf32> -> vector<8x128xf32>
    %c0_9 = arith.constant 0 : index
    %c0_10 = arith.constant 0 : index
    %12 = vector.load %arg5[%c0_9, %c0_10] : memref<1x128xf32, #tpu.memory_space<vmem>>, vector<1x128xf32>
    %13 = vector.broadcast %12 : vector<1x128xf32> to vector<8x128xf32>
    %14 = arith.addf %11, %13 : vector<8x128xf32>
    %cst_11 = arith.constant 0.000000e+00 : f32
    %15 = vector.broadcast %cst_11 : f32 to vector<8x128xf32>
    %16 = arith.maximumf %14, %15 : vector<8x128xf32>
    %17 = arith.truncf %16 : vector<8x128xf32> to vector<8x128xbf16>
    %c0_12 = arith.constant 0 : index
    %c0_13 = arith.constant 0 : index
    %18 = vector.load %arg6[%c0_12, %c0_13] : memref<128x128xbf16, #tpu.memory_space<vmem>>, vector<128x128xbf16>
    %cst_14 = arith.constant dense<0.000000e+00> : vector<8x128xf32>
    %19 = tpu.matmul %17, %18, %cst_14 {dimension_numbers = #tpu.dot_dimension_numbers<[1], [0], [0], [1], [0, 0, 1, 1], [], []>} : vector<8x128xbf16>, vector<128x128xbf16>, vector<8x128xf32> -> vector<8x128xf32>
    %c0_15 = arith.constant 0 : index
    %c0_16 = arith.constant 0 : index
    %20 = vector.load %arg7[%c0_15, %c0_16] : memref<1x128xf32, #tpu.memory_space<vmem>>, vector<1x128xf32>
    %21 = vector.broadcast %20 : vector<1x128xf32> to vector<8x128xf32>
    %22 = arith.addf %19, %21 : vector<8x128xf32>
    %23 = vector.extract_strided_slice %22 {offsets = [0, 0], sizes = [8, 10], strides = [1, 1]} : vector<8x128xf32> to vector<8x10xf32>
    %c0_17 = arith.constant 0 : index
    %c0_18 = arith.constant 0 : index
    %24 = vector.load %arg8[%c0_17, %c0_18] : memref<8x10xf32, #tpu.memory_space<vmem>>, vector<8x10xf32>
    tpu.vector_store %arg8[%c0_17, %c0_18], %23 {strides = array<i32>} : memref<8x10xf32, #tpu.memory_space<vmem>>, vector<8x10xf32>,
    return
  }
  func.func @transform_0(%arg0: i32) -> (i32, i32) {
    %c0_i32 = arith.constant 0 : i32
    %c0_i32_0 = arith.constant 0 : i32
    return %arg0, %c0_i32 : i32, i32
  }
  func.func @transform_1(%arg0: i32) -> (i32, i32) {
    %c0_i32 = arith.constant 0 : i32
    %c0_i32_0 = arith.constant 0 : i32
    %c0_i32_1 = arith.constant 0 : i32
    return %c0_i32, %c0_i32_0 : i32, i32
  }
  func.func @transform_2(%arg0: i32) -> (i32, i32) {
    %c0_i32 = arith.constant 0 : i32
    %c0_i32_0 = arith.constant 0 : i32
    %c0_i32_1 = arith.constant 0 : i32
    return %c0_i32, %c0_i32_0 : i32, i32
  }
  func.func @transform_3(%arg0: i32) -> (i32, i32) {
    %c0_i32 = arith.constant 0 : i32
    %c0_i32_0 = arith.constant 0 : i32
    %c0_i32_1 = arith.constant 0 : i32
    return %c0_i32, %c0_i32_0 : i32, i32
  }
  func.func @transform_4(%arg0: i32) -> (i32, i32) {
    %c0_i32 = arith.constant 0 : i32
    %c0_i32_0 = arith.constant 0 : i32
    %c0_i32_1 = arith.constant 0 : i32
    return %c0_i32, %c0_i32_0 : i32, i32
  }
  func.func @transform_5(%arg0: i32) -> (i32, i32) {
    %c0_i32 = arith.constant 0 : i32
    %c0_i32_0 = arith.constant 0 : i32
    %c0_i32_1 = arith.constant 0 : i32
    return %c0_i32, %c0_i32_0 : i32, i32
  }
  func.func @transform_6(%arg0: i32) -> (i32, i32) {
    %c0_i32 = arith.constant 0 : i32
    %c0_i32_0 = arith.constant 0 : i32
    %c0_i32_1 = arith.constant 0 : i32
    return %c0_i32, %c0_i32_0 : i32, i32
  }
  func.func @transform_7(%arg0: i32) -> (i32, i32) {
    %c0_i32 = arith.constant 0 : i32
    %c0_i32_0 = arith.constant 0 : i32
    return %arg0, %c0_i32 : i32, i32
  }
}

</mosaic_0001>

<bundles_post_ra>
// kernel: tpu_custom_call.1
= control target key start
LH: loop header
LB: loop body
LE: loop exit
PB: predicated region body
PF: predicated region fallthrough
CT: control target
= control target key end

     0   :  { %12 = vsyncpa [#allocation3], 0  ;;  %s783_s0 = inlined_call_operand.hbm [shape: f32[8,32], index: 0, kind: input, shape index: {}]   ;;  %s784_s1 = inlined_call_operand.hbm [shape: bf16[32,256], index: 1, kind: input, shape index: {}]   ;;  %s785_s2 = inlined_call_operand.vmem [shape: f32[1,256], index: 2, kind: input, shape index: {}]   ;;  %s786_s3 = inlined_call_operand.hbm [shape: bf16[256,128], index: 3, kind: input, shape index: {}]   ;;  %s787_s4 = inlined_call_operand.vmem [shape: f32[1,128], index: 4, kind: input, shape index: {}]   ;;  %s788_s5 = inlined_call_operand.hbm [shape: bf16[128,128], index: 5, kind: input, shape index: {}]   ;;  %s789_s6 = inlined_call_operand.vmem [shape: f32[1,128], index: 6, kind: input, shape index: {}]   ;;  %s790_s7 = inlined_call_operand.hbm [shape: f32[8,10], index: 7, kind: output, shape index: {}]  }
   0x1   :  { %13 = vsyncpa [#allocation6], 0 }
   0x2   :  { %14 = vsyncpa [#allocation9], 0 }
   0x3   :  { %15 = vsyncpa [#allocation4], 0  ;;  %s707_s24 = smov [#allocation5]  }
   0x4   :  { %s31_s25 = sshll.u32 %s707_s24, 4  ;;  %s32_s25 = int_to_ptr.vmem [resolvable:$true] %s31_s25 }
   0x5   :  { %s607_s26 = scalar_lea.vmem %s32_s25, 512  ;;  %p612_p1 = scmp.lt.s32.totalorder %s32_s25, %s32_s25 }
   0x6   :  { %p608_p0 = scmp.ne.s32.totalorder %s32_s25, %s607_s26  ;;  %p613_p2 = scmp.lt.s32.totalorder %s607_s26, %s607_s26 }
   0x8   :  { %p614_p3 = por %p613_p2, %p612_p1 }
   0xa   :  { %p615_p4 = pnand %p614_p3, %p608_p0 }
   0xc   :  { %618 = shalt.err (!%p615_p4)
}
   0xd   :  { %s708_s27 = smov 128   ;;  %s709_s28 = smov 8  }
   0xe   :  { %37 = dma.hbm_to_vmem [thread:$0]  %s784_s1, 512, %s32_s25, [#allocation6], %s708_s27, %s708_s27, %s709_s28  }
   0xf   :  { %s710_s8 = smov [#allocation2]   ;;  %s711_s10 = smov [#allocation7]  }
  0x10   :  { %s22_s9 = sshll.u32 %s710_s8, 4  ;;  %s45_s11 = sshll.u32 %s711_s10, 4  ;;  %s23_s9 = int_to_ptr.vmem [resolvable:$true] %s22_s9  ;;  %s46_s11 = int_to_ptr.vmem [resolvable:$true] %s45_s11 }
  0x11   :  { %s627_s12 = scalar_lea.vmem %s23_s9, 128  ;;  %p632_p6 = scmp.lt.s32.totalorder %s23_s9, %s23_s9 }
  0x12   :  { %p628_p5 = scmp.ne.s32.totalorder %s23_s9, %s627_s12  ;;  %p633_p7 = scmp.lt.s32.totalorder %s627_s12, %s627_s12 }
  0x14   :  { %p634_p8 = por %p633_p7, %p632_p6 }
  0x16   :  { %p635_p9 = pnand %p634_p8, %p628_p5 }
  0x18   :  { %638 = shalt.err (!%p635_p9)
}
  0x19   :  { %25 = dma.hbm_to_vmem [thread:$0]  %s783_s0, 128, %s23_s9, [#allocation3]  }
  0x1a   :  { %s647_s15 = scalar_lea.vmem %s46_s11, 2048  ;;  %p652_p11 = scmp.lt.s32.totalorder %s46_s11, %s46_s11 }
  0x1b   :  { %p648_p10 = scmp.ne.s32.totalorder %s46_s11, %s647_s15  ;;  %p653_p12 = scmp.lt.s32.totalorder %s647_s15, %s647_s15 }
  0x1d   :  { %p654_p13 = por %p653_p12, %p652_p11 }
  0x1f   :  { %p655_p0 = pnand %p654_p13, %p648_p10 }
  0x21   :  { %658 = shalt.err (!%p655_p0)
}
  0x22   :  { %s712_s1 = smov 64   ;;  %s713_s16 = smov 4  }
  0x23   :  { %51 = dma.hbm_to_vmem [thread:$0]  %s786_s3, 2048, %s46_s11, [#allocation6], %s712_s1, %s712_s1, %s713_s16  }
  0x24   :  { %s714_s19 = smov [#allocation8]  }
  0x25   :  { %s59_s20 = sshll.u32 %s714_s19, 4  ;;  %s60_s20 = int_to_ptr.vmem [resolvable:$true] %s59_s20 }
  0x26   :  { %s667_s21 = scalar_lea.vmem %s60_s20, 1024  ;;  %p672_p2 = scmp.lt.s32.totalorder %s60_s20, %s60_s20 }
  0x27   :  { %p668_p1 = scmp.ne.s32.totalorder %s60_s20, %s667_s21  ;;  %p673_p3 = scmp.lt.s32.totalorder %s667_s21, %s667_s21 }
  0x29   :  { %p674_p4 = por %p673_p3, %p672_p2 }
  0x2b   :  { %p675_p5 = pnand %p674_p4, %p668_p1 }
  0x2d   :  { %678 = shalt.err (!%p675_p5)
}
  0x2e   :  { %65 = dma.hbm_to_vmem [thread:$0]  %s788_s5, 1024, %s60_s20, [#allocation9], %s712_s1, %s712_s1, %s713_s16  }
  0x2f   :  { %699 = dma.done.wait [#allocation3], 128  }
  0x30   :  { %700 = vsyncadd [#allocation3], 4294967168 }
  0x31   :  { %701 = dma.done.wait [#allocation6], 2560  }
  0x32   :  { %702 = vsyncadd [#allocation6], 4294964736 }
  0x33   :  { %703 = dma.done.wait [#allocation9], 1024  }
  0x34   :  { %704 = vsyncadd [#allocation9], 4294966272  ;;  %v715_v0 = vmov 0   ;;  %v569_v1 = vld [vmem:[#allocation5 + $0x14] ss:$8 sps:$4 sm:$0xff]   ;;  %vm119_vm0 = vcmask 261120   ;;  %v89_v29 = vlaneseq }
  0x35   :  { %155 = vmatprep.mubr.bf16.mxu0 %v715_v0  ;;  %v571_v2 = vld [vmem:[#allocation5 + $0x10] ss:$8 sps:$4 sm:$0xff]   ;;  %135 = vmatprep.subr.bf16.mxu0 %v569_v1  ;;  %v572_v3 = vld [vmem:[#allocation5 + $0x4] ss:$8 sps:$4 sm:$0xff]   ;;  %v574_v4 = vld [vmem:[#allocation5] ss:$8 sps:$4 sm:$0xff]  }
  0x36   :  { %v81_v5 = vld [vmem:[#allocation2] sm:$0xff]  ;;  %136 = vmatpush1.bf16.msra.mxu0 %v571_v2  ;;  %v577_v8 = vld [vmem:[#allocation7 + $0x70] sm:$0xff]   ;;  %v579_v11 = vld [vmem:[#allocation7 + $0x68] sm:$0xff]   ;;  %v716_v24 = vmov 0.0   ;;  %v90_v30 = vshrl.u32 %v89_v29, 7  ;;  %vm717_vm1 = vmmov 0  }
  0x37   :  { %v575_v6 = vld [vmem:[#allocation7 + $0x78] sm:$0xff]   ;;  %137 = vmatprep.subr.bf16.mxu0 %v572_v3  ;;  %v82_v9 = vpack.c.bf16 %v81_v5, %v81_v5  ;;  %v578_v10 = vld [vmem:[#allocation7 + $0x30] sm:$0xff]   ;;  %v580_v12 = vld [vmem:[#allocation7 + $0x28] sm:$0xff]   ;;  %s718_s26 = smov [#allocation10]   ;;  %vm456_vm2 = vcmask 80896  }
  0x38   :  { %v576_v7 = vld [vmem:[#allocation7 + $0x38] sm:$0xff]   ;;  %506 = vmatprep.subr.bf16.mxu1 %v575_v6  ;;  %v581_v13 = vld [vmem:[#allocation7 + $0x60] sm:$0xff]   ;;  %v585_v17 = vld [vmem:[#allocation7 + $0x50] sm:$0xff]   ;;  %v91_v31 = vsub.s32 0, %v90_v30  ;;  %v95_v33 = vsub.s32 1, %v90_v30  ;;  %s464_s27 = sshll.u32 %s718_s26, 4  ;;  %s465_s27 = int_to_ptr.vmem [resolvable:$true] %s464_s27 }
  0x39   :  { %507 = vmatpush3.bf16.msra.mxu1 %v576_v7  ;;  %v582_v14 = vld [vmem:[#allocation7 + $0x20] sm:$0xff]   ;;  %v583_v15 = vld [vmem:[#allocation7 + $0x58] sm:$0xff]   ;;  %v586_v18 = vld [vmem:[#allocation7 + $0x10] sm:$0xff]   ;;  %p684_p7 = scmp.lt.s32.totalorder %s465_s27, %s465_s27 }
  0x3a   :  { %138 = vmatpush1.bf16.msra.mxu0 %v574_v4  ;;  %508 = vmatprep.subr.bf16.mxu1 %v577_v8  ;;  %v584_v16 = vld [vmem:[#allocation7 + $0x18] sm:$0xff]   ;;  %v587_v19 = vld [vmem:[#allocation7 + $0x48] sm:$0xff]   ;;  %v589_v21 = vld [vmem:[#allocation7 + $0x40] sm:$0xff]  }
  0x3b   :  { %v588_v20 = vld [vmem:[#allocation7 + $0x8] sm:$0xff]   ;;  %v590_v22 = vld [vmem:[#allocation7] sm:$0xff]   ;;  %v591_v23 = vld [vmem:[#allocation8 + $0x38] sm:$0xff]   ;;  %537 = vmatprep.subr.bf16.mxu0 %v716_v24 }
  0x3c   :  { %v592_v25 = vld [vmem:[#allocation8 + $0x30] sm:$0xff]   ;;  %v593_v26 = vld [vmem:[#allocation8 + $0x28] sm:$0xff]   ;;  %v594_v27 = vld [vmem:[#allocation8 + $0x20] sm:$0xff]  }
  0x3d   :  { %479 = vmatmul.mubr.msk.bf16.vlgmr.msra.gmra.mxu0 %vm119_vm0, %v82_v9  ;;  %509 = vmatpush3.bf16.msra.mxu1 %v578_v10  ;;  %v595_v28 = vld [vmem:[#allocation8 + $0x18] sm:$0xff]   ;;  %v596_v46 = vld [vmem:[#allocation8 + $0x10] sm:$0xff]   ;;  %v597_v47 = vld [vmem:[#allocation8 + $0x8] sm:$0xff]  }
  0x3e   :  { %510 = vmatprep.subr.bf16.mxu1 %v579_v11  ;;  %538 = vmatpush3.bf16.msra.mxu0 %v591_v23  ;;  %v87_v32 = vld [vmem:[%s785_s2] sm:$0x3]  ;;  %v598_v48 = vld [vmem:[#allocation8] sm:$0xff]  }
  0x3f   :  { %539 = vmatprep.subr.bf16.mxu0 %v716_v24  ;;  %v92_v34 = vrot.slane %v87_v32, %v91_v31  ;;  %v96_v35 = vrot.slane %v87_v32, %v95_v33  ;;  %553 = vmatprep.mubr.msk.bf16.mxu0 %vm717_vm1, %v716_v24  ;;  %v480_v50 = vld [vmem:[%s787_s4] ss:$0 sm:$0xff]  ;;  %s679_s4 = scalar_lea.vmem %s465_s27, 128 }
  0x40   :  { %v497_v58 = vld [vmem:[%s789_s6] ss:$0 sm:$0xff]  ;;  %p680_p6 = scmp.ne.s32.totalorder %s465_s27, %s679_s4  ;;  %p685_p8 = scmp.lt.s32.totalorder %s679_s4, %s679_s4 }
  0x41   :  { %511 = vmatpush3.bf16.msra.mxu1 %v580_v12 }
  0x42   :  { %512 = vmatprep.subr.bf16.mxu1 %v581_v13  ;;  %540 = vmatpush3.bf16.msra.mxu0 %v592_v25  ;;  %p686_p9 = por %p685_p8, %p684_p7 }
  0x43   :  { %541 = vmatprep.subr.bf16.mxu0 %v716_v24 }
  0x44   :  { %p687_p10 = pnand %p686_p9, %p680_p6 }
  0x45   :  { %513 = vmatpush3.bf16.msra.mxu1 %v582_v14 }
  0x46   :  { %514 = vmatprep.subr.bf16.mxu1 %v583_v15  ;;  %542 = vmatpush3.bf16.msra.mxu0 %v593_v26 }
  0x47   :  { %543 = vmatprep.subr.bf16.mxu0 %v716_v24 }
  0x49   :  { %515 = vmatpush3.bf16.msra.mxu1 %v584_v16 }
  0x4a   :  { %516 = vmatprep.subr.bf16.mxu1 %v585_v17  ;;  %544 = vmatpush3.bf16.msra.mxu0 %v594_v27 }
  0x4b   :  { %545 = vmatprep.subr.bf16.mxu0 %v716_v24 }
  0x4d   :  { %517 = vmatpush3.bf16.msra.mxu1 %v586_v18 }
  0x4e   :  { %518 = vmatprep.subr.bf16.mxu1 %v587_v19  ;;  %546 = vmatpush3.bf16.msra.mxu0 %v595_v28 }
  0x4f   :  { %547 = vmatprep.subr.bf16.mxu0 %v716_v24 }
  0x51   :  { %519 = vmatpush3.bf16.msra.mxu1 %v588_v20 }
  0x52   :  { %520 = vmatprep.subr.bf16.mxu1 %v589_v21  ;;  %548 = vmatpush3.bf16.msra.mxu0 %v596_v46 }
  0x53   :  { %549 = vmatprep.subr.bf16.mxu0 %v716_v24 }
  0x55   :  { %521 = vmatpush3.bf16.msra.mxu1 %v590_v22 }
  0x56   :  { %550 = vmatpush3.bf16.msra.mxu0 %v597_v47 }
  0x57   :  { %551 = vmatprep.subr.bf16.mxu0 %v716_v24 }
  0x5a   :  { %552 = vmatpush3.bf16.msra.mxu0 %v598_v48 }
  0xfd   :  { %v157_v36 = vpop.f32.mrf.mxu0 }
  0xfe   :  { %v158_v37 = vadd.f32 %v157_v36, %v92_v34 }
  0xff   :  { %v159_v38 = vpop.f32.mrf.mxu0 }
 0x100   :  { %v160_v39 = vadd.f32 %v159_v38, %v96_v35  ;;  %v164_v40 = vmax.f32 %v158_v37, 0.0 }
 0x101   :  { %v161_v41 = vpop.f32.mrf.mxu0 }
 0x102   :  { %v165_v42 = vmax.f32 %v160_v39, 0.0  ;;  %v166_v45 = vpack.c.bf16 %v164_v40, %v164_v40 }
 0x103   :  { %v162_v43 = vpop.f32.mrf.mxu0 }
 0x104   :  { %v167_v44 = vpack.c.bf16 %v165_v42, %v165_v42 }
 0x106   :  { %335 = vmatprep.mubr.bf16.mxu1 %v167_v44 }
 0x107   :  { %336 = vmatmul.mubr.bf16.vlgmr.msra.gmra.mxu1 %v166_v45 }
 0x1c7   :  { %v522_v49 = vpop.f32.mrf.mxu1 }
 0x1c9   :  { %v523_v51 = vpop.f32.mrf.mxu1 }
 0x1ca   :  { %v524_v52 = vadd.f32 %v523_v51, %v522_v49 }
 0x1cb   :  { %v525_v53 = vpop.f32.mrf.mxu1 }
 0x1cc   :  { %v338_v54 = vadd.f32 %v524_v52, %v480_v50 }
 0x1cd   :  { %v526_v55 = vpop.f32.mrf.mxu1 }
 0x1ce   :  { %v343_v56 = vmax.f32 %v338_v54, 0.0 }
 0x1d0   :  { %v344_v57 = vpack.c.bf16 %v343_v56, %v343_v56 }
 0x1d2   :  { %554 = vmatmul.mubr.bf16.vlgmr.msra.gmra.mxu0 %v344_v57 }
 0x292   :  { %v450_v59 = vpop.f32.mrf.mxu0 }
 0x293   :  { %v451_v60 = vadd.f32 %v497_v58, %v450_v59 }
 0x294   :  { %v555_v61 = vpop.f32.mrf.mxu0 }
 0x295   :  { %457 = vst.msk [vmem:[#allocation10] sm:$0xff] %vm456_vm2, %v451_v60 }
 0x296   :  { %v453_v62 = vpop.f32.mrf.mxu0 }
 0x297   :  { %690 = shalt.err (!%p687_p10)
}
 0x298   :  { %467 = dma.vmem_to_hbm [thread:$0]  %s465_s27, 128, %s790_s7, [#allocation4]   ;;  %v556_v63 = vpop.f32.mrf.mxu0 }
 0x299   :  { %705 = dma.done.wait [#allocation4], 128  }
 0x29a   :  { %706 = vsyncadd [#allocation4], 4294967168 }
 0x29b   :  { %471 = vsyncpa [#allocation3], 1 }
 0x29c   :  { %472 = vsyncpa [#allocation6], 1 }
 0x29d   :  { %473 = vsyncpa [#allocation9], 1 }
 0x29e   :  { %474 = vsyncpa [#allocation4], 1 }

</bundles_post_ra>
